<compile_context>
chip_gen: v7x
topology: tpu7x:2x2x1
jax: 0.10.0
libtpu: 0.0.40
codegen_flags: <defaults>
</compile_context>

<pallas_src>
import functools

import numpy as np
import jax
import jax.numpy as jnp
from jax import lax
from jax.experimental import pallas as pl
from jax.experimental.pallas import tpu as pltpu

C_FEAT = 512          # feature width used by AVENet's nn.Linear(512, 512)
NORM_EPS = 1e-12      # F.normalize default eps (denominator clamp)
EPS_SQ = NORM_EPS * NORM_EPS


def _l2_normalize(v):
    # F.normalize(v, dim=-1) == v / max(||v||, eps) == v * rsqrt(max(sum(v^2), eps^2))
    ss = jnp.sum(v * v, axis=-1, keepdims=True)
    return v * lax.rsqrt(jnp.maximum(ss, EPS_SQ))


def _pick_tb(b):
    """Images per grid step: multiple of 8 (sublane-aligned output blocks), capped at
    32 for v7x VMEM headroom, preferring >= 2 grid steps so both v7x TensorCores get
    work. Batches not divisible by 8 fall back to one whole-batch block."""
    if b % 8 != 0:
        # TODO(synk): very large batches that are not multiples of 8 would need batch
        # padding to keep the per-step block inside VMEM; fine at demo scale.
        return b
    for tb in (32, 16, 8):
        if b % tb == 0 and b // tb >= 2:
            return tb
    return min(b, 32)


# -----------------------------------------------------------------------------
# Stand-in backbone stem: strided pointwise conv + ReLU.
# TODO(synk): `base_models.resnet18` (vision/audio backbones) is an external module not
# defined in the snippet; it is replaced by this deterministic pointwise-conv stem
# producing [B, HW, 512] bf16 feature maps.
#
# Cin is only 1-3, so the contraction is done as VPU broadcast multiply-adds instead of
# a degenerate-K MXU matmul; the input keeps its true Cin (no 42x HBM padding) and the
# bf16 cast happens on the output inside the kernel (no wrapper-side HBM copies).
# -----------------------------------------------------------------------------
def _stem_kernel(x_ref, w_ref, o_ref):
    x = x_ref[...]                       # (tn, cin) f32
    w = w_ref[...]                       # (cin, cout) f32
    cin = x.shape[1]
    acc = x[:, 0:1] * w[0:1, :]          # lane-broadcast x col, sublane-broadcast w row
    for k in range(1, cin):              # static, tiny (cin <= 3)
        acc = acc + x[:, k:k + 1] * w[k:k + 1, :]
    o_ref[...] = jnp.maximum(acc, 0.0).astype(o_ref.dtype)


def pointwise_conv_relu(x2d, w):
    n, cin = x2d.shape
    cout = w.shape[1]
    # memory-bound: large row tiles amortize the ~0.35us per-grid-step overhead
    tn = 1024 if n >= 1024 else max(16, ((n + 15) // 16) * 16)
    n_pad = ((n + tn - 1) // tn) * tn
    if n_pad != n:
        x2d = jnp.pad(x2d, ((0, n_pad - n), (0, 0)))
    out = pl.pallas_call(
        _stem_kernel,
        out_shape=jax.ShapeDtypeStruct((n_pad, cout), jnp.bfloat16),
        grid_spec=pltpu.PrefetchScalarGridSpec(
            num_scalar_prefetch=0,
            grid=(n_pad // tn,),
            in_specs=[pl.BlockSpec((tn, cin), lambda i: (i, 0)),     # last dim == full dim
                      pl.BlockSpec((cin, cout), lambda i: (0, 0))],  # resident tiny weight
            out_specs=pl.BlockSpec((tn, cout), lambda i: (i, 0))),
        compiler_params=pltpu.CompilerParams(dimension_semantics=("parallel",)),
    )(x2d, w)
    return out[:n]


def backbone_stem(x_nchw, w_stem, stride=2):
    """NCHW input -> [B, HW, C] channel-last bf16 feature map (glue + Pallas kernel)."""
    b, cin, _, _ = x_nchw.shape
    xs = x_nchw[:, :, ::stride, ::stride]
    hs, ws = xs.shape[2], xs.shape[3]
    x2d = jnp.transpose(xs, (0, 2, 3, 1)).reshape(b * hs * ws, cin)
    out = pointwise_conv_relu(x2d, w_stem)
    return out.reshape(b, hs * ws, w_stem.shape[1])


def backbone_stem_ref(x_nchw, w_stem, stride=2):
    xs = x_nchw[:, :, ::stride, ::stride]
    b, cin, hs, ws = xs.shape
    x2d = jnp.transpose(xs, (0, 2, 3, 1)).reshape(b * hs * ws, cin)
    return jnp.maximum(x2d @ w_stem, 0.0).reshape(b, hs * ws, -1)


# -----------------------------------------------------------------------------
# Kernel 1: audio prep — max-pool over HW, L2-normalize (bf16 out for the sim kernel),
# audio projection + normalize (audio_emb). Runs once, batch-tiled.
# -----------------------------------------------------------------------------
def _aud_prep_kernel(aud_ref, wa_ref, ba_ref, aud_unit_ref, aud_emb_ref):
    pool = jnp.max(aud_ref[...], axis=1)                 # (tb, C) bf16 (max is exact)
    pool_f32 = pool.astype(jnp.float32)
    ss = jnp.sum(pool_f32 * pool_f32, axis=-1, keepdims=True)
    aud_unit_ref[...] = (pool_f32 * lax.rsqrt(jnp.maximum(ss, EPS_SQ))).astype(jnp.bfloat16)
    proj = jnp.dot(pool, wa_ref[...],
                   preferred_element_type=jnp.float32) + ba_ref[...]
    aud_emb_ref[...] = _l2_normalize(proj)               # audio_emb rows


# -----------------------------------------------------------------------------
# Kernel 2: sim rows + fused image projection. Per grid step: TB images.
#   a0     : one batched MXU matmul, aud_unit(B,C) @ x_unit(tb*hw,C)^T -> (B, tb*hw)
#   num/den: per-image sums over HW done as a segment-indicator matmul so sim is
#            produced directly as a lane-dense (tb, B) row block (no lane-split
#            reshape of a0, no 1-lane masked stores, no in-kernel/wrapper transpose).
# -----------------------------------------------------------------------------
def _sim_kernel(img_ref, aud_unit_ref, wi_ref, bi_ref, img_emb_ref, sim_ref, *,
                epsilon, inv_tau):
    tb, hw, c = img_ref.shape
    x = img_ref[...]                                     # (tb, hw, C) bf16

    # --- global max-pool + fused image projection + normalize -> image_emb ---
    pool = jnp.max(x, axis=1)                            # (tb, C) bf16
    proj = jnp.dot(pool, wi_ref[...],
                   preferred_element_type=jnp.float32) + bi_ref[...]
    img_emb_ref[...] = _l2_normalize(proj)

    # --- per-location L2 normalize over C (f32 math), bf16 operands for the MXU ---
    xf = x.astype(jnp.float32)
    ss = jnp.sum(xf * xf, axis=-1, keepdims=True)
    x_unit = (xf * lax.rsqrt(jnp.maximum(ss, EPS_SQ))).astype(jnp.bfloat16)
    x2 = x_unit.reshape(tb * hw, c)                      # layout-trivial merge (hw % 8 == 0)

    # --- one batched A0 matmul: (B, C) x (tb*hw, C)^T -> (B, tb*hw), f32 accumulate ---
    a0 = lax.dot_general(aud_unit_ref[...], x2,
                         (((1,), (1,)), ((), ())),
                         preferred_element_type=jnp.float32)
    pos = jax.nn.sigmoid((a0 - epsilon) * inv_tau)       # multiply, not divide (VPU not EUP)
    pa = pos * a0

    # --- segment sums over HW: seg[t, j] = 1 iff location j belongs to image t ---
    r = lax.broadcasted_iota(jnp.int32, (tb, tb * hw), 0)
    j = lax.broadcasted_iota(jnp.int32, (tb, tb * hw), 1)
    lo = r * hw
    seg = jnp.where(jnp.logical_and(j >= lo, j < lo + hw), 1.0, 0.0).astype(jnp.float32)
    num_t = lax.dot_general(seg, pa, (((1,), (1,)), ((), ())),
                            preferred_element_type=jnp.float32)   # (tb, B)
    den_t = lax.dot_general(seg, pos, (((1,), (1,)), ((), ())),
                            preferred_element_type=jnp.float32)   # (tb, B)
    # approx reciprocal (EUP) -> ~1e-3 relative error in sim; fine for this head.
    sim_ref[...] = num_t * pl.reciprocal(den_t, approx=True)      # lane-dense (tb, B) store


def avenet_head(img_feat, aud_feat, w_img, b_img, w_aud, b_aud, epsilon, tau):
    b, hw, c = img_feat.shape
    tb = _pick_tb(b)
    wi_t = jnp.transpose(w_img).astype(jnp.bfloat16)     # nn.Linear does x @ W.T
    wa_t = jnp.transpose(w_aud).astype(jnp.bfloat16)
    bi2 = b_img.reshape(1, c).astype(jnp.float32)
    ba2 = b_aud.reshape(1, c).astype(jnp.float32)

    # --- 1) audio path, once ---
    aud_unit, audio_emb = pl.pallas_call(
        _aud_prep_kernel,
        out_shape=(jax.ShapeDtypeStruct((b, c), jnp.bfloat16),   # normalized pooled audio
                   jax.ShapeDtypeStruct((b, c), jnp.float32)),   # audio_emb
        grid_spec=pltpu.PrefetchScalarGridSpec(
            num_scalar_prefetch=0,
            grid=(b // tb,),
            in_specs=[pl.BlockSpec((tb, hw, c), lambda i: (i, 0, 0)),
                      pl.BlockSpec((c, c), lambda i: (0, 0)),
                      pl.BlockSpec((1, c), lambda i: (0, 0))],
            out_specs=[pl.BlockSpec((tb, c), lambda i: (i, 0)),
                       pl.BlockSpec((tb, c), lambda i: (i, 0))]),
        compiler_params=pltpu.CompilerParams(dimension_semantics=("parallel",)),
    )(aud_feat, wa_t, ba2)

    # --- 2) sim rows + fused image projection (TB images per step) ---
    kernel = functools.partial(_sim_kernel, epsilon=float(epsilon), inv_tau=float(1.0 / tau))
    image_emb, sim = pl.pallas_call(
        kernel,
        out_shape=(jax.ShapeDtypeStruct((b, c), jnp.float32),    # image_emb
                   jax.ShapeDtypeStruct((b, b), jnp.float32)),   # sim (image, audio)
        grid_spec=pltpu.PrefetchScalarGridSpec(
            num_scalar_prefetch=0,
            grid=(b // tb,),
            in_specs=[pl.BlockSpec((tb, hw, c), lambda i: (i, 0, 0)),
                      pl.BlockSpec((b, c), lambda i: (0, 0)),    # resident audio units
                      pl.BlockSpec((c, c), lambda i: (0, 0)),    # resident img_proj weight
                      pl.BlockSpec((1, c), lambda i: (0, 0))],   # resident img_proj bias
            out_specs=[pl.BlockSpec((tb, c), lambda i: (i, 0)),
                       pl.BlockSpec((tb, b), lambda i: (i, 0))]),  # lane-dense row blocks
        compiler_params=pltpu.CompilerParams(dimension_semantics=("parallel",)),
    )(img_feat, aud_unit, wi_t, bi2)

    return image_emb, audio_emb, sim


# -----------------------------------------------------------------------------
# Pure-JAX reference of the head (PyTorch semantics) for a correctness check.
# -----------------------------------------------------------------------------
def head_reference(img_feat, aud_feat, w_img, b_img, w_aud, b_aud, epsilon, tau):
    img_feat = img_feat.astype(jnp.float32)
    aud_feat = aud_feat.astype(jnp.float32)

    def l2n(v):
        n = jnp.sqrt(jnp.sum(v * v, axis=-1, keepdims=True))
        return v / jnp.maximum(n, NORM_EPS)

    aud_pool = aud_feat.max(axis=1)
    aud_unit = l2n(aud_pool)
    img_unit = l2n(img_feat)                                    # per-location over C
    a0 = jnp.einsum('nhc,kc->nhk', img_unit, aud_unit)
    pos = jax.nn.sigmoid((a0 - epsilon) / tau)
    sim = (pos * a0).sum(axis=1) / pos.sum(axis=1)
    image_emb = l2n(img_feat.max(axis=1) @ w_img.T + b_img)
    audio_emb = l2n(aud_pool @ w_aud.T + b_aud)
    return image_emb, audio_emb, sim


if __name__ == "__main__":
    key = jax.random.PRNGKey(0)
    ks = jax.random.split(key, 8)

    B, HI, WI = 2, 16, 16
    epsilon, tau = 0.65, 0.03            # args.epsilon, self.tau

    # PyTorch NCHW inputs: image [B,3,H,W], audio spectrogram [B,1,H,W]
    image = jax.random.normal(ks[0], (B, 3, HI, WI), jnp.float32)
    audio = jax.random.normal(ks[1], (B, 1, HI, WI), jnp.float32)

    # Deterministic parameters (synthetic, module-shaped)
    w_img_stem = 0.1 * jax.random.normal(ks[2], (3, C_FEAT), jnp.float32)
    w_aud_stem = 0.1 * jax.random.normal(ks[3], (1, C_FEAT), jnp.float32)
    w_img = jax.random.normal(ks[4], (C_FEAT, C_FEAT), jnp.float32) / jnp.sqrt(C_FEAT)
    b_img = 0.01 * jax.random.normal(ks[5], (C_FEAT,), jnp.float32)
    w_aud = jax.random.normal(ks[6], (C_FEAT, C_FEAT), jnp.float32) / jnp.sqrt(C_FEAT)
    b_aud = 0.01 * jax.random.normal(ks[7], (C_FEAT,), jnp.float32)

    # Stand-in backbones (Pallas pointwise-conv stem) -> [B, HW, 512] bf16
    img_feat = backbone_stem(image, w_img_stem)
    aud_feat = backbone_stem(audio, w_aud_stem)

    # AVENet head (Pallas)
    image_emb, audio_emb, sim = avenet_head(
        img_feat, aud_feat, w_img, b_img, w_aud, b_aud, epsilon, tau)
    jax.block_until_ready((image_emb, audio_emb, sim))

    # Correctness checks against pure-JAX references (loose tol: bf16 features/operands)
    img_feat_ref = backbone_stem_ref(image, w_img_stem)
    aud_feat_ref = backbone_stem_ref(audio, w_aud_stem)
    np.testing.assert_allclose(np.asarray(img_feat.astype(jnp.float32)),
                               np.asarray(img_feat_ref), rtol=0, atol=5e-2)
    np.testing.assert_allclose(np.asarray(aud_feat.astype(jnp.float32)),
                               np.asarray(aud_feat_ref), rtol=0, atol=5e-2)

    ref_ie, ref_ae, ref_sim = head_reference(
        img_feat, aud_feat, w_img, b_img, w_aud, b_aud, epsilon, tau)
    np.testing.assert_allclose(np.asarray(image_emb), np.asarray(ref_ie),
                               rtol=0, atol=5e-2)
    np.testing.assert_allclose(np.asarray(audio_emb), np.asarray(ref_ae),
                               rtol=0, atol=5e-2)
    np.testing.assert_allclose(np.asarray(sim), np.asarray(ref_sim),
                               rtol=0, atol=5e-2)

    assert image_emb.shape == (B, C_FEAT)
    assert audio_emb.shape == (B, C_FEAT)
    assert sim.shape == (B, B)
    print("KERNEL_OK")
</pallas_src>

<mosaic_0001>
module attributes {stable_mosaic.version = 11 : i64} {
  func.func @_stem_kernel(%arg0: i32, %arg1: memref<128x3xf32, #tpu.memory_space<vmem>>, %arg2: memref<3x512xf32, #tpu.memory_space<vmem>>, %arg3: memref<128x512xbf16, #tpu.memory_space<vmem>>) attributes {dimension_semantics = [#tpu.dimension_semantics<parallel>], iteration_bounds = array<i64: 1>, scalar_prefetch = 0 : i64, scratch_operands = 0 : i64, tpu.core_type = #tpu.core_type<tc>, window_params = [{transform_indices = @transform_0, window_bounds = array<i64: 128, 3>}, {pipeline_mode = #tpu.pipeline_mode<synchronous>, transform_indices = @transform_1, window_bounds = array<i64: 3, 512>}, {transform_indices = @transform_2, window_bounds = array<i64: 128, 512>}]} {
    %c0 = arith.constant 0 : index
    %c0_0 = arith.constant 0 : index
    %0 = vector.load %arg1[%c0, %c0_0] : memref<128x3xf32, #tpu.memory_space<vmem>>, vector<128x3xf32>
    %c0_1 = arith.constant 0 : index
    %c0_2 = arith.constant 0 : index
    %1 = vector.load %arg2[%c0_1, %c0_2] : memref<3x512xf32, #tpu.memory_space<vmem>>, vector<3x512xf32>
    %2 = vector.extract_strided_slice %0 {offsets = [0, 0], sizes = [128, 1], strides = [1, 1]} : vector<128x3xf32> to vector<128x1xf32>
    %3 = vector.extract_strided_slice %1 {offsets = [0, 0], sizes = [1, 512], strides = [1, 1]} : vector<3x512xf32> to vector<1x512xf32>
    %4 = vector.broadcast %2 : vector<128x1xf32> to vector<128x512xf32>
    %5 = vector.broadcast %3 : vector<1x512xf32> to vector<128x512xf32>
    %6 = arith.mulf %4, %5 : vector<128x512xf32>
    %7 = vector.extract_strided_slice %0 {offsets = [0, 1], sizes = [128, 1], strides = [1, 1]} : vector<128x3xf32> to vector<128x1xf32>
    %8 = vector.extract_strided_slice %1 {offsets = [1, 0], sizes = [1, 512], strides = [1, 1]} : vector<3x512xf32> to vector<1x512xf32>
    %9 = vector.broadcast %7 : vector<128x1xf32> to vector<128x512xf32>
    %10 = vector.broadcast %8 : vector<1x512xf32> to vector<128x512xf32>
    %11 = arith.mulf %9, %10 : vector<128x512xf32>
    %12 = arith.addf %6, %11 : vector<128x512xf32>
    %13 = vector.extract_strided_slice %0 {offsets = [0, 2], sizes = [128, 1], strides = [1, 1]} : vector<128x3xf32> to vector<128x1xf32>
    %14 = vector.extract_strided_slice %1 {offsets = [2, 0], sizes = [1, 512], strides = [1, 1]} : vector<3x512xf32> to vector<1x512xf32>
    %15 = vector.broadcast %13 : vector<128x1xf32> to vector<128x512xf32>
    %16 = vector.broadcast %14 : vector<1x512xf32> to vector<128x512xf32>
    %17 = arith.mulf %15, %16 : vector<128x512xf32>
    %18 = arith.addf %12, %17 : vector<128x512xf32>
    %cst = arith.constant 0.000000e+00 : f32
    %19 = vector.broadcast %cst : f32 to vector<128x512xf32>
    %20 = arith.maximumf %18, %19 : vector<128x512xf32>
    %21 = arith.truncf %20 : vector<128x512xf32> to vector<128x512xbf16>
    %c0_3 = arith.constant 0 : index
    %c0_4 = arith.constant 0 : index
    %22 = vector.load %arg3[%c0_3, %c0_4] : memref<128x512xbf16, #tpu.memory_space<vmem>>, vector<128x512xbf16>
    tpu.vector_store %arg3[%c0_3, %c0_4], %21 {strides = array<i32>} : memref<128x512xbf16, #tpu.memory_space<vmem>>, vector<128x512xbf16>,
    return
  }
  func.func @transform_0(%arg0: i32) -> (i32, i32) {
    %c0_i32 = arith.constant 0 : i32
    %c0_i32_0 = arith.constant 0 : i32
    return %arg0, %c0_i32 : i32, i32
  }
  func.func @transform_1(%arg0: i32) -> (i32, i32) {
    %c0_i32 = arith.constant 0 : i32
    %c0_i32_0 = arith.constant 0 : i32
    %c0_i32_1 = arith.constant 0 : i32
    return %c0_i32, %c0_i32_0 : i32, i32
  }
  func.func @transform_2(%arg0: i32) -> (i32, i32) {
    %c0_i32 = arith.constant 0 : i32
    %c0_i32_0 = arith.constant 0 : i32
    return %arg0, %c0_i32 : i32, i32
  }
}

</mosaic_0001>

<bundles_post_ra>
// kernel: tpu_custom_call.1
= control target key start
LH: loop header
LB: loop body
LE: loop exit
PB: predicated region body
PF: predicated region fallthrough
CT: control target
= control target key end

     0   :  { %v1072_v2 = vmov 0   ;;  %s1759_s0 = inlined_call_operand.vmem [shape: f32[128,3], index: 0, kind: input, shape index: {}]   ;;  %s1760_s1 = inlined_call_operand.vmem [shape: f32[3,512], index: 1, kind: input, shape index: {}]   ;;  %s1761_s2 = inlined_call_operand.hbm [shape: bf16[128,512], index: 2, kind: output, shape index: {}]  }
   0x1   :  { %v14_v0 = vld [vmem:[%s1759_s0 + $0x10] sm:$0xff]  ;;  %v12_v1 = vld [vmem:[%s1759_s0] sm:$0xff]  ;;  %1043 = vset.pattern.permute.xlu1 %v1072_v2  ;;  %1042 = vset.pattern.permute.xlu0 %v1072_v2  ;;  %v15_v3 = vld [vmem:[%s1759_s0 + $0x18] sm:$0xff] }
   0x2   :  { %42 = vperm.xlu1 %1043, %v14_v0   ;;  %32 = vperm.xlu0 %1042, %v12_v1   ;;  %v13_v4 = vld [vmem:[%s1759_s0 + $0x8] sm:$0xff] }
   0x6   :  { %47 = vperm.xlu1 %1043, %v15_v3   ;;  %37 = vperm.xlu0 %1042, %v13_v4  }
   0x7   :  { %7 = vsyncpa [#allocation3], 0  ;;  %v17_v5 = vld [vmem:[%s1759_s0 + $0x28] sm:$0xff]  ;;  %v16_v6 = vld [vmem:[%s1759_s0 + $0x20] sm:$0xff]  ;;  %v1073_v17 = vmov 1   ;;  %v1074_v18 = vmov 2   ;;  %v112_v19 = vlaneseq }
   0x8   :  { %v19_v7 = vld [vmem:[%s1759_s0 + $0x38] sm:$0xff]  ;;  %v18_v8 = vld [vmem:[%s1759_s0 + $0x30] sm:$0xff]  ;;  %v21_v9 = vld [vmem:[%s1759_s0 + $0x48] sm:$0xff] }
   0x9   :  { %v20_v10 = vld [vmem:[%s1759_s0 + $0x40] sm:$0xff]  ;;  %v23_v11 = vld [vmem:[%s1759_s0 + $0x58] sm:$0xff]  ;;  %v22_v12 = vld [vmem:[%s1759_s0 + $0x50] sm:$0xff]  ;;  %v113_v22 = vshrl.u32 %v112_v19, 7 }
   0xa   :  { %57 = vperm.xlu1 %1043, %v17_v5   ;;  %52 = vperm.xlu0 %1042, %v16_v6   ;;  %v25_v13 = vld [vmem:[%s1759_s0 + $0x68] sm:$0xff]  ;;  %v24_v14 = vld [vmem:[%s1759_s0 + $0x60] sm:$0xff]  ;;  %v27_v15 = vld [vmem:[%s1759_s0 + $0x78] sm:$0xff] }
   0xb   :  { %v26_v16 = vld [vmem:[%s1759_s0 + $0x70] sm:$0xff]  ;;  %v114_v25 = vsub.s32 0, %v113_v22  ;;  %v118_v26 = vsub.s32 4, %v113_v22  ;;  %v28_v27 = vld [vmem:[%s1760_s1] sm:$0x77]  ;;  %v278_v31 = vsub.s32 1, %v113_v22 }
   0xc   :  { %v29_v28 = vld [vmem:[%s1760_s1 + $0x8] sm:$0x77]  ;;  %v282_v32 = vsub.s32 5, %v113_v22  ;;  %v506_v33 = vsub.s32 2, %v113_v22  ;;  %v510_v34 = vsub.s32 6, %v113_v22  ;;  %s1075_s1 = smov [#allocation2]  }
   0xd   :  { %v115_v35 = vrot.slane %v28_v27, %v114_v25  ;;  %v119_v36 = vrot.slane %v28_v27, %v118_v26  ;;  %v123_v37 = vrot.slane %v29_v28, %v114_v25  ;;  %v127_v38 = vrot.slane %v29_v28, %v118_v26  ;;  %s961_s16 = sshll.u32 %s1075_s1, 4  ;;  %s962_s16 = int_to_ptr.vmem [resolvable:$true] %s961_s16 }
   0xe   :  { %67 = vperm.xlu1 %1043, %v19_v7   ;;  %62 = vperm.xlu0 %1042, %v18_v8   ;;  %v279_v41 = vrot.slane %v28_v27, %v278_v31  ;;  %v283_v42 = vrot.slane %v28_v27, %v282_v32  ;;  %v287_v43 = vrot.slane %v29_v28, %v278_v31  ;;  %s1048_s17 = scalar_lea.vmem %s962_s16, 4096  ;;  %p1053_p1 = scmp.lt.s32.totalorder %s962_s16, %s962_s16 }
   0xf   :  { %v291_v44 = vrot.slane %v29_v28, %v282_v32  ;;  %v507_v45 = vrot.slane %v28_v27, %v506_v33  ;;  %v511_v46 = vrot.slane %v28_v27, %v510_v34  ;;  %v515_v47 = vrot.slane %v29_v28, %v506_v33  ;;  %p1049_p0 = scmp.ne.s32.totalorder %s962_s16, %s1048_s17  ;;  %p1054_p2 = scmp.lt.s32.totalorder %s1048_s17, %s1048_s17 }
  0x10   :  { %v519_v48 = vrot.slane %v29_v28, %v510_v34  ;;  %v1147_v49 = vrot.slane %v115_v35, %v114_v25  ;;  %v1149_v50 = vrot.slane %v119_v36, %v114_v25  ;;  %v1151_v51 = vrot.slane %v123_v37, %v114_v25 }
  0x11   :  { %v1153_v52 = vrot.slane %v127_v38, %v114_v25  ;;  %v1155_v55 = vrot.slane %v279_v41, %v278_v31  ;;  %v1157_v56 = vrot.slane %v283_v42, %v278_v31  ;;  %v1159_v57 = vrot.slane %v287_v43, %v278_v31  ;;  %p1055_p3 = por %p1054_p2, %p1053_p1 }
  0x12   :  { %77 = vperm.xlu1 %1043, %v21_v9   ;;  %72 = vperm.xlu0 %1042, %v20_v10   ;;  %v1161_v58 = vrot.slane %v291_v44, %v278_v31  ;;  %v1163_v59 = vrot.slane %v507_v45, %v506_v33  ;;  %v1165_v60 = vrot.slane %v511_v46, %v506_v33 }
  0x13   :  { %v1167_v61 = vrot.slane %v515_v47, %v506_v33  ;;  %v1169_v62 = vrot.slane %v519_v48, %v506_v33  ;;  %p1056_p4 = pnand %p1055_p3, %p1049_p0 }
  0x14   :  { %1766 = vst [vmem:[#allocation5_spill] sm:$0xff] %v1163_v59  ;;  %1767 = vst [vmem:[#allocation6_spill] sm:$0xff] %v1165_v60 }
  0x15   :  { %1768 = vst [vmem:[#allocation7_spill] sm:$0xff] %v1167_v61  ;;  %1769 = vst [vmem:[#allocation8_spill] sm:$0xff] %v1169_v62 }
  0x16   :  { %87 = vperm.xlu1 %1043, %v23_v11   ;;  %82 = vperm.xlu0 %1042, %v22_v12  }
  0x1a   :  { %97 = vperm.xlu1 %1043, %v25_v13   ;;  %92 = vperm.xlu0 %1042, %v24_v14  }
  0x1e   :  { %107 = vperm.xlu1 %1043, %v27_v15   ;;  %102 = vperm.xlu0 %1042, %v26_v16  }
  0x22   :  { %1045 = vset.pattern.permute.xlu1 %v1073_v17  ;;  %1044 = vset.pattern.permute.xlu0 %v1073_v17 }
  0x23   :  { %217 = vperm.xlu1 %1045, %v13_v4   ;;  %213 = vperm.xlu0 %1044, %v12_v1  }
  0x27   :  { %221 = vperm.xlu1 %1045, %v14_v0   ;;  %225 = vperm.xlu0 %1044, %v15_v3  }
  0x2b   :  { %229 = vperm.xlu1 %1045, %v16_v6   ;;  %233 = vperm.xlu0 %1044, %v17_v5  }
  0x2f   :  { %237 = vperm.xlu1 %1045, %v18_v8   ;;  %241 = vperm.xlu0 %1044, %v19_v7  }
  0x33   :  { %245 = vperm.xlu1 %1045, %v20_v10   ;;  %249 = vperm.xlu0 %1044, %v21_v9  }
  0x37   :  { %253 = vperm.xlu1 %1045, %v22_v12   ;;  %257 = vperm.xlu0 %1044, %v23_v11  }
  0x3b   :  { %261 = vperm.xlu1 %1045, %v24_v14   ;;  %265 = vperm.xlu0 %1044, %v25_v13  }
  0x3f   :  { %269 = vperm.xlu1 %1045, %v26_v16   ;;  %273 = vperm.xlu0 %1044, %v27_v15  }
  0x43   :  { %1046 = vset.pattern.permute.xlu1 %v1074_v18  ;;  %1047 = vset.pattern.permute.xlu0 %v1074_v18 }
  0x44   :  { %441 = vperm.xlu1 %1046, %v12_v1   ;;  %445 = vperm.xlu0 %1047, %v13_v4  }
  0x48   :  { %449 = vperm.xlu1 %1046, %v14_v0   ;;  %457 = vperm.xlu0 %1047, %v16_v6  }
  0x4c   :  { %453 = vperm.xlu1 %1046, %v15_v3   ;;  %465 = vperm.xlu0 %1047, %v18_v8  }
  0x50   :  { %461 = vperm.xlu1 %1046, %v17_v5   ;;  %473 = vperm.xlu0 %1047, %v20_v10  }
  0x54   :  { %469 = vperm.xlu1 %1046, %v19_v7   ;;  %481 = vperm.xlu0 %1047, %v22_v12  }
  0x58   :  { %477 = vperm.xlu1 %1046, %v21_v9   ;;  %489 = vperm.xlu0 %1047, %v24_v14  }
  0x5c   :  { %485 = vperm.xlu1 %1046, %v23_v11   ;;  %497 = vperm.xlu0 %1047, %v26_v16  }
  0x60   :  { %493 = vperm.xlu1 %1046, %v25_v13  }
  0x64   :  { %501 = vperm.xlu1 %1046, %v27_v15  }
  0x81   :  { %v43_v20 = vpop.permute.xlu1 %42  ;;  %v33_v21 = vpop.permute.xlu0 %32 }
  0x82   :  { %v1172_v63 = vmul.f32 %v1147_v49, %v43_v20  ;;  %v1175_v0 = vmul.f32 %v1149_v50, %v43_v20  ;;  %v1178_v1 = vmul.f32 %v1151_v51, %v43_v20  ;;  %v1181_v2 = vmul.f32 %v1153_v52, %v43_v20 }
  0x83   :  { %v1184_v3 = vmul.f32 %v1147_v49, %v33_v21  ;;  %v1187_v4 = vmul.f32 %v1149_v50, %v33_v21  ;;  %v1190_v5 = vmul.f32 %v1151_v51, %v33_v21  ;;  %v1193_v6 = vmul.f32 %v1153_v52, %v33_v21 }
  0x85   :  { %v48_v23 = vpop.permute.xlu1 %47  ;;  %v38_v24 = vpop.permute.xlu0 %37 }
  0x86   :  { %v1196_v9 = vmul.f32 %v1147_v49, %v48_v23  ;;  %v1199_v10 = vmul.f32 %v1149_v50, %v48_v23  ;;  %v1202_v11 = vmul.f32 %v1151_v51, %v48_v23  ;;  %v1205_v12 = vmul.f32 %v1153_v52, %v48_v23 }
  0x87   :  { %v1208_v13 = vmul.f32 %v1147_v49, %v38_v24  ;;  %v1211_v14 = vmul.f32 %v1149_v50, %v38_v24  ;;  %v1214_v15 = vmul.f32 %v1151_v51, %v38_v24  ;;  %v1217_v16 = vmul.f32 %v1153_v52, %v38_v24 }
  0x89   :  { %v58_v29 = vpop.permute.xlu1 %57  ;;  %v53_v30 = vpop.permute.xlu0 %52 }
  0x8a   :  { %v1220_v17 = vmul.f32 %v1147_v49, %v58_v29  ;;  %v1223_v18 = vmul.f32 %v1149_v50, %v58_v29  ;;  %v1226_v19 = vmul.f32 %v1151_v51, %v58_v29  ;;  %v1229_v20 = vmul.f32 %v1153_v52, %v58_v29 }
  0x8b   :  { %v1232_v21 = vmul.f32 %v1147_v49, %v53_v30  ;;  %v1235_v22 = vmul.f32 %v1149_v50, %v53_v30  ;;  %v1238_v23 = vmul.f32 %v1151_v51, %v53_v30  ;;  %v1241_v24 = vmul.f32 %v1153_v52, %v53_v30 }
  0x8d   :  { %v68_v39 = vpop.permute.xlu1 %67  ;;  %v63_v40 = vpop.permute.xlu0 %62 }
  0x8e   :  { %v1244_v27 = vmul.f32 %v1147_v49, %v68_v39  ;;  %v1247_v28 = vmul.f32 %v1149_v50, %v68_v39  ;;  %v1250_v29 = vmul.f32 %v1151_v51, %v68_v39  ;;  %v1253_v31 = vmul.f32 %v1153_v52, %v68_v39 }
  0x8f   :  { %v1256_v32 = vmul.f32 %v1147_v49, %v63_v40  ;;  %v1259_v30 = vmul.f32 %v1149_v50, %v63_v40  ;;  %v1262_v33 = vmul.f32 %v1151_v51, %v63_v40  ;;  %v1265_v34 = vmul.f32 %v1153_v52, %v63_v40 }
  0x91   :  { %v78_v53 = vpop.permute.xlu1 %77  ;;  %v73_v54 = vpop.permute.xlu0 %72 }
  0x92   :  { %v1268_v35 = vmul.f32 %v1147_v49, %v78_v53  ;;  %v1271_v36 = vmul.f32 %v1149_v50, %v78_v53  ;;  %v1274_v37 = vmul.f32 %v1151_v51, %v78_v53  ;;  %v1277_v38 = vmul.f32 %v1153_v52, %v78_v53 }
  0x93   :  { %v1280_v39 = vmul.f32 %v1147_v49, %v73_v54  ;;  %v1283_v41 = vmul.f32 %v1149_v50, %v73_v54  ;;  %v1286_v40 = vmul.f32 %v1151_v51, %v73_v54  ;;  %v1289_v42 = vmul.f32 %v1153_v52, %v73_v54 }
  0x95   :  { %v88_v7 = vpop.permute.xlu1 %87  ;;  %v83_v8 = vpop.permute.xlu0 %82 }
  0x96   :  { %v1292_v45 = vmul.f32 %v1147_v49, %v88_v7  ;;  %v1295_v46 = vmul.f32 %v1149_v50, %v88_v7  ;;  %v1298_v47 = vmul.f32 %v1151_v51, %v88_v7  ;;  %v1301_v48 = vmul.f32 %v1153_v52, %v88_v7 }
  0x97   :  { %v1304_v53 = vmul.f32 %v1147_v49, %v83_v8  ;;  %v1307_v54 = vmul.f32 %v1149_v50, %v83_v8  ;;  %v1310_v62 = vmul.f32 %v1151_v51, %v83_v8  ;;  %v1313_v61 = vmul.f32 %v1153_v52, %v83_v8 }
  0x98   :  { %1770 = vst [vmem:[#allocation9_spill] sm:$0xff] %v1292_v45  ;;  %1771 = vst [vmem:[#allocation10_spill] sm:$0xff] %v1295_v46 }
  0x99   :  { %v98_v25 = vpop.permute.xlu1 %97  ;;  %v93_v26 = vpop.permute.xlu0 %92  ;;  %1772 = vst [vmem:[#allocation11_spill] sm:$0xff] %v1298_v47  ;;  %1773 = vst [vmem:[#allocation12_spill] sm:$0xff] %v1301_v48 }
  0x9a   :  { %1774 = vst [vmem:[#allocation13_spill] sm:$0xff] %v1310_v62  ;;  %1775 = vst [vmem:[#allocation14_spill] sm:$0xff] %v1313_v61  ;;  %v1316_v60 = vmul.f32 %v1147_v49, %v98_v25  ;;  %v1319_v59 = vmul.f32 %v1149_v50, %v98_v25  ;;  %v1322_v7 = vmul.f32 %v1151_v51, %v98_v25 }
  0x9b   :  { %v1325_v48 = vmul.f32 %v1153_v52, %v98_v25  ;;  %v1328_v47 = vmul.f32 %v1147_v49, %v93_v26  ;;  %v1331_v46 = vmul.f32 %v1149_v50, %v93_v26  ;;  %v1334_v8 = vmul.f32 %v1151_v51, %v93_v26 }
  0x9c   :  { %1776 = vst [vmem:[#allocation15_spill] sm:$0xff] %v1316_v60  ;;  %1777 = vst [vmem:[#allocation16_spill] sm:$0xff] %v1319_v59  ;;  %v1337_v60 = vmul.f32 %v1153_v52, %v93_v26 }
  0x9d   :  { %v108_v43 = vpop.permute.xlu1 %107  ;;  %v103_v44 = vpop.permute.xlu0 %102  ;;  %1778 = vst [vmem:[#allocation17_spill] sm:$0xff] %v1322_v7  ;;  %1779 = vst [vmem:[#allocation18_spill] sm:$0xff] %v1325_v48 }
  0x9e   :  { %1780 = vst [vmem:[#allocation19_spill] sm:$0xff] %v1328_v47  ;;  %1781 = vst [vmem:[#allocation20_spill] sm:$0xff] %v1331_v46  ;;  %v1340_v59 = vmul.f32 %v1147_v49, %v108_v43  ;;  %v1343_v7 = vmul.f32 %v1149_v50, %v108_v43  ;;  %v1346_v25 = vmul.f32 %v1151_v51, %v108_v43 }
  0x9f   :  { %1782 = vst [vmem:[#allocation21_spill] sm:$0xff] %v1334_v8  ;;  %1783 = vst [vmem:[#allocation22_spill] sm:$0xff] %v1337_v60  ;;  %v1349_v48 = vmul.f32 %v1153_v52, %v108_v43  ;;  %v1365_v43 = vmul.f32 %v1153_v52, %v103_v44 }
  0xa0   :  { %1784 = vst [vmem:[#allocation23_spill] sm:$0xff] %v1340_v59  ;;  %1785 = vst [vmem:[#allocation24_spill] sm:$0xff] %v1343_v7  ;;  %v1356_v59 = vmul.f32 %v1147_v49, %v103_v44  ;;  %v1359_v7 = vmul.f32 %v1149_v50, %v103_v44 }
  0xa1   :  { %1786 = vst [vmem:[#allocation25_spill] sm:$0xff] %v1346_v25  ;;  %1787 = vst [vmem:[#allocation26_spill] sm:$0xff] %v1349_v48  ;;  %v1362_v25 = vmul.f32 %v1151_v51, %v103_v44 }
  0xa2   :  { %v218_v47 = vpop.permute.xlu1 %217  ;;  %v214_v46 = vpop.permute.xlu0 %213  ;;  %1788 = vst [vmem:[#allocation27_spill] sm:$0xff] %v1359_v7  ;;  %1790 = vst [vmem:[#allocation29_spill] sm:$0xff] %v1365_v43 }
  0xa3   :  { %v316_v45 = vmul.f32 %v1155_v55, %v218_v47  ;;  %v317_v8 = vmul.f32 %v1157_v56, %v218_v47  ;;  %v318_v26 = vmul.f32 %v1159_v57, %v218_v47  ;;  %v319_v60 = vmul.f32 %v1161_v58, %v218_v47  ;;  %1789 = vst [vmem:[#allocation28_spill] sm:$0xff] %v1362_v25 }
  0xa4   :  { %v312_v48 = vmul.f32 %v1155_v55, %v214_v46  ;;  %v313_v61 = vmul.f32 %v1157_v56, %v214_v46  ;;  %v314_v62 = vmul.f32 %v1159_v57, %v214_v46  ;;  %v315_v47 = vmul.f32 %v1161_v58, %v214_v46 }
  0xa5   :  { %v1372_v49 = vadd.f32 %v316_v45, %v1208_v13  ;;  %v1375_v50 = vadd.f32 %v317_v8, %v1211_v14  ;;  %v1378_v51 = vadd.f32 %v318_v26, %v1214_v15  ;;  %v1381_v52 = vadd.f32 %v319_v60, %v1217_v16 }
  0xa6   :  { %v222_v44 = vpop.permute.xlu1 %221  ;;  %v226_v43 = vpop.permute.xlu0 %225  ;;  %v1392_v60 = vadd.f32 %v312_v48, %v1184_v3  ;;  %v1395_v16 = vadd.f32 %v313_v61, %v1187_v4  ;;  %v1398_v26 = vadd.f32 %v314_v62, %v1190_v5 }
  0xa7   :  { %1791 = vst [vmem:[#allocation30_spill] sm:$0xff] %v1378_v51  ;;  %1792 = vst [vmem:[#allocation31_spill] sm:$0xff] %v1381_v52  ;;  %v320_v25 = vmul.f32 %v1155_v55, %v222_v44  ;;  %v321_v7 = vmul.f32 %v1157_v56, %v222_v44  ;;  %v322_v46 = vmul.f32 %v1159_v57, %v222_v44 }
  0xa8   :  { %v323_v13 = vmul.f32 %v1161_v58, %v222_v44  ;;  %v324_v45 = vmul.f32 %v1155_v55, %v226_v43  ;;  %v325_v14 = vmul.f32 %v1157_v56, %v226_v43  ;;  %v326_v15 = vmul.f32 %v1159_v57, %v226_v43 }
  0xa9   :  { %v327_v8 = vmul.f32 %v1161_v58, %v226_v43  ;;  %v1401_v52 = vadd.f32 %v315_v47, %v1193_v6  ;;  %v1404_v44 = vadd.f32 %v320_v25, %v1172_v63  ;;  %v1407_v51 = vadd.f32 %v321_v7, %v1175_v0 }
  0xaa   :  { %v1410_v43 = vadd.f32 %v322_v46, %v1178_v1  ;;  %v1413_v3 = vadd.f32 %v323_v13, %v1181_v2  ;;  %v230_v61 = vpop.permute.xlu1 %229  ;;  %v234_v4 = vpop.permute.xlu0 %233  ;;  %v1420_v48 = vadd.f32 %v324_v45, %v1196_v9  ;;  %v1423_v0 = vadd.f32 %v325_v14, %v1199_v10 }
  0xab   :  { %v328_v62 = vmul.f32 %v1155_v55, %v230_v61  ;;  %v329_v5 = vmul.f32 %v1157_v56, %v230_v61  ;;  %v330_v6 = vmul.f32 %v1159_v57, %v230_v61  ;;  %v331_v63 = vmul.f32 %v1161_v58, %v230_v61 }
  0xac   :  { %v1426_v1 = vadd.f32 %v326_v15, %v1202_v11  ;;  %v1429_v2 = vadd.f32 %v327_v8, %v1205_v12  ;;  %v332_v7 = vmul.f32 %v1155_v55, %v234_v4  ;;  %v333_v25 = vmul.f32 %v1157_v56, %v234_v4 }
  0xad   :  { %v334_v47 = vmul.f32 %v1159_v57, %v234_v4  ;;  %v335_v46 = vmul.f32 %v1161_v58, %v234_v4  ;;  %v1436_v9 = vadd.f32 %v328_v62, %v1232_v21  ;;  %v1439_v10 = vadd.f32 %v329_v5, %v1235_v22 }
  0xae   :  { %v1442_v11 = vadd.f32 %v330_v6, %v1238_v23  ;;  %v1445_v12 = vadd.f32 %v331_v63, %v1241_v24  ;;  %v238_v13 = vpop.permute.xlu1 %237  ;;  %v242_v45 = vpop.permute.xlu0 %241  ;;  %v1456_v24 = vadd.f32 %v332_v7, %v1220_v17  ;;  %v1459_v62 = vadd.f32 %v333_v25, %v1223_v18 }
  0xaf   :  { %v336_v14 = vmul.f32 %v1155_v55, %v238_v13  ;;  %v337_v15 = vmul.f32 %v1157_v56, %v238_v13  ;;  %v338_v8 = vmul.f32 %v1159_v57, %v238_v13  ;;  %v339_v21 = vmul.f32 %v1161_v58, %v238_v13 }
  0xb0   :  { %v340_v61 = vmul.f32 %v1155_v55, %v242_v45  ;;  %v341_v22 = vmul.f32 %v1157_v56, %v242_v45  ;;  %v342_v23 = vmul.f32 %v1159_v57, %v242_v45  ;;  %v343_v4 = vmul.f32 %v1161_v58, %v242_v45 }
  0xb1   :  { %v1462_v5 = vadd.f32 %v334_v47, %v1226_v19  ;;  %v1465_v6 = vadd.f32 %v335_v46, %v1229_v20  ;;  %v1468_v63 = vadd.f32 %v336_v14, %v1256_v32  ;;  %v1471_v13 = vadd.f32 %v337_v15, %v1259_v30 }
  0xb2   :  { %v1474_v45 = vadd.f32 %v338_v8, %v1262_v33  ;;  %v1477_v17 = vadd.f32 %v339_v21, %v1265_v34  ;;  %v246_v18 = vpop.permute.xlu1 %245  ;;  %v250_v7 = vpop.permute.xlu0 %249  ;;  %v1484_v47 = vadd.f32 %v340_v61, %v1244_v27  ;;  %v1487_v30 = vadd.f32 %v341_v22, %v1247_v28 }
  0xb3   :  { %v344_v19 = vmul.f32 %v1155_v55, %v246_v18  ;;  %v345_v25 = vmul.f32 %v1157_v56, %v246_v18  ;;  %v346_v20 = vmul.f32 %v1159_v57, %v246_v18  ;;  %v347_v32 = vmul.f32 %v1161_v58, %v246_v18 }
  0xb4   :  { %v1490_v33 = vadd.f32 %v342_v23, %v1250_v29  ;;  %v1493_v34 = vadd.f32 %v343_v4, %v1253_v31  ;;  %v348_v46 = vmul.f32 %v1155_v55, %v250_v7  ;;  %v349_v14 = vmul.f32 %v1157_v56, %v250_v7 }
  0xb5   :  { %v350_v15 = vmul.f32 %v1159_v57, %v250_v7  ;;  %v351_v8 = vmul.f32 %v1161_v58, %v250_v7  ;;  %v1500_v27 = vadd.f32 %v344_v19, %v1280_v39  ;;  %v1503_v28 = vadd.f32 %v345_v25, %v1283_v41 }
  0xb6   :  { %1793 = vst [vmem:[#allocation32_spill] sm:$0xff] %v1493_v34  ;;  %v1506_v29 = vadd.f32 %v346_v20, %v1286_v40  ;;  %v1509_v31 = vadd.f32 %v347_v32, %v1289_v42  ;;  %v254_v21 = vpop.permute.xlu1 %253  ;;  %v258_v61 = vpop.permute.xlu0 %257  ;;  %v1520_v42 = vadd.f32 %v348_v46, %v1268_v35  ;;  %v1523_v19 = vadd.f32 %v349_v14, %v1271_v36  ;;  %v1798_v34 = vld [vmem:[#allocation13_spill] sm:$0xff]  ;;  %v1799_v35 = vld [vmem:[#allocation14_spill] sm:$0xff] }
  0xb7   :  { %v352_v22 = vmul.f32 %v1155_v55, %v254_v21  ;;  %v353_v23 = vmul.f32 %v1157_v56, %v254_v21  ;;  %v354_v4 = vmul.f32 %v1159_v57, %v254_v21  ;;  %v355_v39 = vmul.f32 %v1161_v58, %v254_v21 }
  0xb8   :  { %v356_v18 = vmul.f32 %v1155_v55, %v258_v61  ;;  %v357_v41 = vmul.f32 %v1157_v56, %v258_v61  ;;  %v358_v40 = vmul.f32 %v1159_v57, %v258_v61  ;;  %v359_v7 = vmul.f32 %v1161_v58, %v258_v61  ;;  %1794 = vst [vmem:[#allocation33_spill] sm:$0xff] %v1520_v42  ;;  %v1808_v42 = vld [vmem:[#allocation19_spill] sm:$0xff] }
  0xb9   :  { %1795 = vst [vmem:[#allocation34_spill] sm:$0xff] %v1523_v19  ;;  %v1526_v25 = vadd.f32 %v350_v15, %v1274_v37  ;;  %v1529_v20 = vadd.f32 %v351_v8, %v1277_v38  ;;  %v1532_v32 = vadd.f32 %v352_v22, %v1304_v53  ;;  %v1535_v21 = vadd.f32 %v353_v23, %v1307_v54  ;;  %v1800_v8 = vld [vmem:[#allocation9_spill] sm:$0xff]  ;;  %v1802_v54 = vld [vmem:[#allocation10_spill] sm:$0xff] }
  0xba   :  { %v1538_v61 = vadd.f32 %v354_v4, %v1798_v34  ;;  %v1541_v46 = vadd.f32 %v355_v39, %v1799_v35  ;;  %v262_v36 = vpop.permute.xlu1 %261  ;;  %v266_v14 = vpop.permute.xlu0 %265  ;;  %v1548_v22 = vadd.f32 %v356_v18, %v1800_v8  ;;  %v1551_v23 = vadd.f32 %v357_v41, %v1802_v54  ;;  %v1804_v34 = vld [vmem:[#allocation11_spill] sm:$0xff]  ;;  %v1806_v39 = vld [vmem:[#allocation12_spill] sm:$0xff]  ;;  %v1812_v54 = vld [vmem:[#allocation21_spill] sm:$0xff] }
  0xbb   :  { %1796 = vst [vmem:[#allocation35_spill] sm:$0xff] %v1526_v25  ;;  %1797 = vst [vmem:[#allocation36_spill] sm:$0xff] %v1529_v20  ;;  %v360_v37 = vmul.f32 %v1155_v55, %v262_v36  ;;  %v361_v15 = vmul.f32 %v1157_v56, %v262_v36  ;;  %v362_v38 = vmul.f32 %v1159_v57, %v262_v36  ;;  %v1810_v8 = vld [vmem:[#allocation20_spill] sm:$0xff] }
  0xbc   :  { %v363_v53 = vmul.f32 %v1161_v58, %v262_v36  ;;  %1801 = vst [vmem:[#allocation13_spill] sm:$0xff] %v1548_v22  ;;  %1803 = vst [vmem:[#allocation14_spill] sm:$0xff] %v1551_v23  ;;  %v1554_v4 = vadd.f32 %v358_v40, %v1804_v34  ;;  %v1557_v35 = vadd.f32 %v359_v7, %v1806_v39  ;;  %v1814_v34 = vld [vmem:[#allocation22_spill] sm:$0xff] }
  0xbd   :  { %v364_v20 = vmul.f32 %v1155_v55, %v266_v14  ;;  %v365_v25 = vmul.f32 %v1157_v56, %v266_v14  ;;  %v366_v19 = vmul.f32 %v1159_v57, %v266_v14  ;;  %v367_v36 = vmul.f32 %v1161_v58, %v266_v14 }
  0xbe   :  { %1805 = vst [vmem:[#allocation9_spill] sm:$0xff] %v1554_v4  ;;  %1807 = vst [vmem:[#allocation10_spill] sm:$0xff] %v1557_v35  ;;  %v1564_v18 = vadd.f32 %v360_v37, %v1808_v42  ;;  %v1567_v41 = vadd.f32 %v361_v15, %v1810_v8  ;;  %v1570_v40 = vadd.f32 %v362_v38, %v1812_v54  ;;  %v270_v39 = vpop.permute.xlu1 %269  ;;  %v274_v35 = vpop.permute.xlu0 %273 }
  0xbf   :  { %v1573_v7 = vadd.f32 %v363_v53, %v1814_v34  ;;  %v368_v4 = vmul.f32 %v1155_v55, %v270_v39  ;;  %v369_v23 = vmul.f32 %v1157_v56, %v270_v39  ;;  %v370_v14 = vmul.f32 %v1159_v57, %v270_v39  ;;  %v1816_v53 = vld [vmem:[#allocation15_spill] sm:$0xff]  ;;  %v1818_v34 = vld [vmem:[#allocation16_spill] sm:$0xff] }
  0xc0   :  { %1809 = vst [vmem:[#allocation11_spill] sm:$0xff] %v1564_v18  ;;  %1811 = vst [vmem:[#allocation12_spill] sm:$0xff] %v1567_v41  ;;  %v371_v42 = vmul.f32 %v1161_v58, %v270_v39  ;;  %v372_v37 = vmul.f32 %v1155_v55, %v274_v35  ;;  %v373_v15 = vmul.f32 %v1157_v56, %v274_v35  ;;  %v1822_v41 = vld [vmem:[#allocation18_spill] sm:$0xff]  ;;  %v1825_v56 = vld [vmem:[#allocation27_spill] sm:$0xff] }
  0xc1   :  { %1813 = vst [vmem:[#allocation19_spill] sm:$0xff] %v1570_v40  ;;  %1815 = vst [vmem:[#allocation20_spill] sm:$0xff] %v1573_v7  ;;  %v374_v38 = vmul.f32 %v1159_v57, %v274_v35  ;;  %v375_v8 = vmul.f32 %v1161_v58, %v274_v35  ;;  %v1584_v54 = vadd.f32 %v364_v20, %v1816_v53  ;;  %v1820_v7 = vld [vmem:[#allocation17_spill] sm:$0xff]  ;;  %v1827_v57 = vld [vmem:[#allocation28_spill] sm:$0xff] }
  0xc2   :  { %v1587_v22 = vadd.f32 %v365_v25, %v1818_v34  ;;  %v1590_v40 = vadd.f32 %v366_v19, %v1820_v7  ;;  %v1593_v18 = vadd.f32 %v367_v36, %v1822_v41  ;;  %v1596_v55 = vadd.f32 %v368_v4, %v1356_v59  ;;  %v1829_v20 = vld [vmem:[#allocation29_spill] sm:$0xff]  ;;  %v1831_v34 = vld [vmem:[#allocation23_spill] sm:$0xff]  ;;  %v1833_v7 = vld [vmem:[#allocation24_spill] sm:$0xff] }
  0xc3   :  { %1817 = vst [vmem:[#allocation21_spill] sm:$0xff] %v1584_v54  ;;  %v1599_v39 = vadd.f32 %v369_v23, %v1825_v56  ;;  %v1602_v58 = vadd.f32 %v370_v14, %v1827_v57  ;;  %v1605_v35 = vadd.f32 %v371_v42, %v1829_v20  ;;  %v442_v25 = vpop.permute.xlu1 %441  ;;  %v446_v53 = vpop.permute.xlu0 %445  ;;  %v1608_v19 = vadd.f32 %v372_v37, %v1831_v34  ;;  %v1835_v41 = vld [vmem:[#allocation25_spill] sm:$0xff]  ;;  %v1837_v4 = vld [vmem:[#allocation26_spill] sm:$0xff]  ;;  %v1841_v42 = vld [vmem:[#allocation7_spill] sm:$0xff] }
  0xc4   :  { %1819 = vst [vmem:[#allocation22_spill] sm:$0xff] %v1587_v22  ;;  %1821 = vst [vmem:[#allocation15_spill] sm:$0xff] %v1590_v40  ;;  %v1611_v36 = vadd.f32 %v373_v15, %v1833_v7  ;;  %v1614_v59 = vadd.f32 %v374_v38, %v1835_v41  ;;  %v1617_v23 = vadd.f32 %v375_v8, %v1837_v4  ;;  %v1839_v56 = vld [vmem:[#allocation5_spill] sm:$0xff]  ;;  %v1840_v57 = vld [vmem:[#allocation6_spill] sm:$0xff] }
  0xc5   :  { %1823 = vst [vmem:[#allocation16_spill] sm:$0xff] %v1593_v18  ;;  %1824 = vst [vmem:[#allocation17_spill] sm:$0xff] %v1596_v55  ;;  %v540_v14 = vmul.f32 %v1839_v56, %v442_v25  ;;  %v541_v18 = vmul.f32 %v1840_v57, %v442_v25  ;;  %v542_v20 = vmul.f32 %v1841_v42, %v442_v25  ;;  %v1842_v40 = vld [vmem:[#allocation8_spill] sm:$0xff] }
  0xc6   :  { %1826 = vst [vmem:[#allocation18_spill] sm:$0xff] %v1599_v39  ;;  %1828 = vst [vmem:[#allocation27_spill] sm:$0xff] %v1602_v58  ;;  %v543_v22 = vmul.f32 %v1842_v40, %v442_v25  ;;  %v544_v37 = vmul.f32 %v1839_v56, %v446_v53  ;;  %v545_v34 = vmul.f32 %v1840_v57, %v446_v53 }
  0xc7   :  { %1830 = vst [vmem:[#allocation28_spill] sm:$0xff] %v1605_v35  ;;  %1832 = vst [vmem:[#allocation29_spill] sm:$0xff] %v1608_v19  ;;  %v546_v15 = vmul.f32 %v1841_v42, %v446_v53  ;;  %v547_v38 = vmul.f32 %v1842_v40, %v446_v53  ;;  %v604_v7 = vadd.f32 %v540_v14, %v1392_v60  ;;  %v1844_v19 = vld [vmem:[#allocation31_spill] sm:$0xff]  ;;  %v450_v35 = vpop.permute.xlu1 %449 }
  0xc8   :  { %1834 = vst [vmem:[#allocation23_spill] sm:$0xff] %v1611_v36  ;;  %1836 = vst [vmem:[#allocation24_spill] sm:$0xff] %v1614_v59  ;;  %v605_v8 = vadd.f32 %v541_v18, %v1395_v16  ;;  %v606_v41 = vadd.f32 %v542_v20, %v1398_v26  ;;  %v607_v4 = vadd.f32 %v543_v22, %v1401_v52  ;;  %v1843_v59 = vld [vmem:[#allocation30_spill] sm:$0xff]  ;;  %v458_v26 = vpop.permute.xlu0 %457 }
  0xc9   :  { %1838 = vst [vmem:[#allocation25_spill] sm:$0xff] %v1617_v23  ;;  %v608_v23 = vadd.f32 %v544_v37, %v1372_v49  ;;  %v609_v25 = vadd.f32 %v545_v34, %v1375_v50  ;;  %v610_v36 = vadd.f32 %v546_v15, %v1843_v59  ;;  %v611_v54 = vadd.f32 %v547_v38, %v1844_v19 }
  0xca   :  { %v668_v58 = vmax.f32 %v604_v7, 0.0  ;;  %v669_v39 = vmax.f32 %v605_v8, 0.0  ;;  %v670_v53 = vmax.f32 %v606_v41, 0.0  ;;  %v671_v55 = vmax.f32 %v607_v4, 0.0 }
  0xcb   :  { %v672_v60 = vmax.f32 %v608_v23, 0.0  ;;  %v673_v14 = vmax.f32 %v609_v25, 0.0  ;;  %v674_v16 = vmax.f32 %v610_v36, 0.0  ;;  %v675_v18 = vmax.f32 %v611_v54, 0.0  ;;  %v454_v15 = vpop.permute.xlu1 %453 }
  0xcc   :  { %v1004_v20 = vpack.c.bf16 %v669_v39, %v668_v58  ;;  %v1005_v52 = vpack.c.bf16 %v671_v55, %v670_v53  ;;  %v548_v49 = vmul.f32 %v1839_v56, %v450_v35  ;;  %v549_v50 = vmul.f32 %v1840_v57, %v450_v35 }
  0xcd   :  { %v1006_v22 = vpack.c.bf16 %v673_v14, %v672_v60  ;;  %v1007_v59 = vpack.c.bf16 %v675_v18, %v674_v16  ;;  %v550_v19 = vmul.f32 %v1841_v42, %v450_v35  ;;  %v551_v37 = vmul.f32 %v1842_v40, %v450_v35  ;;  %v466_v14 = vpop.permute.xlu0 %465 }
  0xce   :  { %924 = vst [vmem:[#allocation2] sm:$0xff] %v1004_v20  ;;  %925 = vst [vmem:[#allocation2 + $0x8] sm:$0xff] %v1005_v52  ;;  %v612_v23 = vadd.f32 %v548_v49, %v1404_v44  ;;  %v613_v36 = vadd.f32 %v549_v50, %v1407_v51  ;;  %v556_v54 = vmul.f32 %v1839_v56, %v458_v26 }
  0xcf   :  { %v557_v55 = vmul.f32 %v1840_v57, %v458_v26  ;;  %926 = vst [vmem:[#allocation2 + $0x10] sm:$0xff] %v1006_v22  ;;  %927 = vst [vmem:[#allocation2 + $0x18] sm:$0xff] %v1007_v59  ;;  %v614_v39 = vadd.f32 %v550_v19, %v1410_v43  ;;  %v615_v58 = vadd.f32 %v551_v37, %v1413_v3  ;;  %v462_v59 = vpop.permute.xlu1 %461 }
  0xd0   :  { %v558_v34 = vmul.f32 %v1841_v42, %v458_v26  ;;  %v559_v35 = vmul.f32 %v1842_v40, %v458_v26  ;;  %v676_v38 = vmax.f32 %v612_v23, 0.0  ;;  %v677_v7 = vmax.f32 %v613_v36, 0.0 }
  0xd1   :  { %v620_v44 = vadd.f32 %v556_v54, %v1436_v9  ;;  %v621_v51 = vadd.f32 %v557_v55, %v1439_v10  ;;  %v678_v8 = vmax.f32 %v614_v39, 0.0  ;;  %v679_v41 = vmax.f32 %v615_v58, 0.0 }
  0xd2   :  { %v622_v4 = vadd.f32 %v558_v34, %v1442_v11  ;;  %v623_v25 = vadd.f32 %v559_v35, %v1445_v12  ;;  %v1008_v43 = vpack.c.bf16 %v677_v7, %v676_v38  ;;  %v552_v60 = vmul.f32 %v1839_v56, %v454_v15  ;;  %v474_v7 = vpop.permute.xlu0 %473 }
  0xd3   :  { %v684_v53 = vmax.f32 %v620_v44, 0.0  ;;  %v685_v3 = vmax.f32 %v621_v51, 0.0  ;;  %v1009_v16 = vpack.c.bf16 %v679_v41, %v678_v8  ;;  %v553_v20 = vmul.f32 %v1840_v57, %v454_v15 }
  0xd4   :  { %v686_v18 = vmax.f32 %v622_v4, 0.0  ;;  %v687_v26 = vmax.f32 %v623_v25, 0.0  ;;  %928 = vst [vmem:[#allocation2 + $0x20] sm:$0xff] %v1008_v43  ;;  %v554_v10 = vmul.f32 %v1841_v42, %v454_v15  ;;  %v555_v52 = vmul.f32 %v1842_v40, %v454_v15 }
  0xd5   :  { %v1012_v9 = vpack.c.bf16 %v685_v3, %v684_v53  ;;  %v616_v11 = vadd.f32 %v552_v60, %v1420_v48  ;;  %929 = vst [vmem:[#allocation2 + $0x28] sm:$0xff] %v1009_v16  ;;  %v617_v49 = vadd.f32 %v553_v20, %v1423_v0  ;;  %v564_v50 = vmul.f32 %v1839_v56, %v466_v14  ;;  %v470_v3 = vpop.permute.xlu1 %469 }
  0xd6   :  { %v1013_v12 = vpack.c.bf16 %v687_v26, %v686_v18  ;;  %v565_v22 = vmul.f32 %v1840_v57, %v466_v14  ;;  %v618_v19 = vadd.f32 %v554_v10, %v1426_v1  ;;  %v619_v37 = vadd.f32 %v555_v52, %v1429_v2 }
  0xd7   :  { %932 = vst [vmem:[#allocation2 + $0x40] sm:$0xff] %v1012_v9  ;;  %v680_v23 = vmax.f32 %v616_v11, 0.0  ;;  %v566_v36 = vmul.f32 %v1841_v42, %v466_v14  ;;  %v681_v54 = vmax.f32 %v617_v49, 0.0  ;;  %v567_v48 = vmul.f32 %v1842_v40, %v466_v14 }
  0xd8   :  { %933 = vst [vmem:[#allocation2 + $0x48] sm:$0xff] %v1013_v12  ;;  %v628_v55 = vadd.f32 %v564_v50, %v1468_v63  ;;  %v629_v0 = vadd.f32 %v565_v22, %v1471_v13  ;;  %v682_v39 = vmax.f32 %v618_v19, 0.0  ;;  %v683_v58 = vmax.f32 %v619_v37, 0.0  ;;  %v482_v50 = vpop.permute.xlu0 %481 }
  0xd9   :  { %v630_v34 = vadd.f32 %v566_v36, %v1474_v45  ;;  %v560_v35 = vmul.f32 %v1839_v56, %v462_v59  ;;  %v1010_v1 = vpack.c.bf16 %v681_v54, %v680_v23  ;;  %v631_v2 = vadd.f32 %v567_v48, %v1477_v17 }
  0xda   :  { %v692_v15 = vmax.f32 %v628_v55, 0.0  ;;  %v693_v38 = vmax.f32 %v629_v0, 0.0  ;;  %v1011_v44 = vpack.c.bf16 %v683_v58, %v682_v39  ;;  %v561_v8 = vmul.f32 %v1840_v57, %v462_v59  ;;  %v478_v55 = vpop.permute.xlu1 %477  ;;  %v1845_v39 = vld [vmem:[#allocation32_spill] sm:$0xff] }
  0xdb   :  { %v694_v51 = vmax.f32 %v630_v34, 0.0  ;;  %v562_v63 = vmul.f32 %v1841_v42, %v462_v59  ;;  %930 = vst [vmem:[#allocation2 + $0x30] sm:$0xff] %v1010_v1  ;;  %v695_v13 = vmax.f32 %v631_v2, 0.0  ;;  %v563_v4 = vmul.f32 %v1842_v40, %v462_v59 }
  0xdc   :  { %v1016_v41 = vpack.c.bf16 %v693_v38, %v692_v15  ;;  %v624_v45 = vadd.f32 %v560_v35, %v1456_v24  ;;  %931 = vst [vmem:[#allocation2 + $0x38] sm:$0xff] %v1011_v44  ;;  %v625_v25 = vadd.f32 %v561_v8, %v1459_v62  ;;  %v572_v43 = vmul.f32 %v1839_v56, %v474_v7 }
  0xdd   :  { %v626_v17 = vadd.f32 %v562_v63, %v1462_v5  ;;  %v573_v53 = vmul.f32 %v1840_v57, %v474_v7  ;;  %v1017_v60 = vpack.c.bf16 %v695_v13, %v694_v51  ;;  %v627_v14 = vadd.f32 %v563_v4, %v1465_v6  ;;  %v490_v13 = vpop.permute.xlu0 %489 }
  0xde   :  { %936 = vst [vmem:[#allocation2 + $0x60] sm:$0xff] %v1016_v41  ;;  %v688_v16 = vmax.f32 %v624_v45, 0.0  ;;  %v574_v18 = vmul.f32 %v1841_v42, %v474_v7  ;;  %v689_v26 = vmax.f32 %v625_v25, 0.0  ;;  %v575_v24 = vmul.f32 %v1842_v40, %v474_v7 }
  0xdf   :  { %v690_v20 = vmax.f32 %v626_v17, 0.0  ;;  %v636_v62 = vadd.f32 %v572_v43, %v1500_v27  ;;  %937 = vst [vmem:[#allocation2 + $0x68] sm:$0xff] %v1017_v60  ;;  %v691_v5 = vmax.f32 %v627_v14, 0.0  ;;  %v637_v9 = vadd.f32 %v573_v53, %v1503_v28  ;;  %v1847_v53 = vld [vmem:[#allocation34_spill] sm:$0xff]  ;;  %v1848_v60 = vld [vmem:[#allocation35_spill] sm:$0xff] }
  0xe0   :  { %v638_v10 = vadd.f32 %v574_v18, %v1506_v29  ;;  %v568_v52 = vmul.f32 %v1839_v56, %v470_v3  ;;  %v1014_v11 = vpack.c.bf16 %v689_v26, %v688_v16  ;;  %v639_v6 = vadd.f32 %v575_v24, %v1509_v31  ;;  %v1849_v16 = vld [vmem:[#allocation36_spill] sm:$0xff] }
  0xe1   :  { %v700_v12 = vmax.f32 %v636_v62, 0.0  ;;  %v569_v49 = vmul.f32 %v1840_v57, %v470_v3  ;;  %v1015_v22 = vpack.c.bf16 %v691_v5, %v690_v20  ;;  %v701_v59 = vmax.f32 %v637_v9, 0.0 }
  0xe2   :  { %v702_v19 = vmax.f32 %v638_v10, 0.0  ;;  %v570_v27 = vmul.f32 %v1841_v42, %v470_v3  ;;  %934 = vst [vmem:[#allocation2 + $0x50] sm:$0xff] %v1014_v11  ;;  %v703_v37 = vmax.f32 %v639_v6, 0.0  ;;  %v571_v28 = vmul.f32 %v1842_v40, %v470_v3 }
  0xe3   :  { %v632_v29 = vadd.f32 %v568_v52, %v1484_v47  ;;  %v633_v23 = vadd.f32 %v569_v49, %v1487_v30  ;;  %935 = vst [vmem:[#allocation2 + $0x58] sm:$0xff] %v1015_v22  ;;  %v1020_v36 = vpack.c.bf16 %v701_v59, %v700_v12  ;;  %v580_v54 = vmul.f32 %v1839_v56, %v482_v50  ;;  %v1850_v12 = vld [vmem:[#allocation11_spill] sm:$0xff] }
  0xe4   :  { %v634_v31 = vadd.f32 %v570_v27, %v1490_v33  ;;  %v581_v48 = vmul.f32 %v1840_v57, %v482_v50  ;;  %v1021_v0 = vpack.c.bf16 %v703_v37, %v702_v19  ;;  %v635_v58 = vadd.f32 %v571_v28, %v1845_v39  ;;  %v1852_v27 = vld [vmem:[#allocation19_spill] sm:$0xff]  ;;  %v1853_v28 = vld [vmem:[#allocation20_spill] sm:$0xff] }
  0xe5   :  { %v696_v34 = vmax.f32 %v632_v29, 0.0  ;;  %v697_v35 = vmax.f32 %v633_v23, 0.0  ;;  %940 = vst [vmem:[#allocation2 + $0x80] sm:$0xff] %v1020_v36  ;;  %v582_v47 = vmul.f32 %v1841_v42, %v482_v50  ;;  %v583_v30 = vmul.f32 %v1842_v40, %v482_v50  ;;  %v1851_v50 = vld [vmem:[#allocation12_spill] sm:$0xff]  ;;  %v498_v36 = vpop.permute.xlu0 %497 }
  0xe6   :  { %v698_v1 = vmax.f32 %v634_v31, 0.0  ;;  %v644_v2 = vadd.f32 %v580_v54, %v1532_v32  ;;  %941 = vst [vmem:[#allocation2 + $0x88] sm:$0xff] %v1021_v0  ;;  %v699_v33 = vmax.f32 %v635_v58, 0.0  ;;  %v645_v38 = vadd.f32 %v581_v48, %v1535_v21  ;;  %v1846_v21 = vld [vmem:[#allocation33_spill] sm:$0xff] }
  0xe7   :  { %v1018_v15 = vpack.c.bf16 %v697_v35, %v696_v34  ;;  %v576_v7 = vmul.f32 %v1839_v56, %v478_v55  ;;  %v646_v44 = vadd.f32 %v582_v47, %v1538_v61  ;;  %v647_v51 = vadd.f32 %v583_v30, %v1541_v46  ;;  %v486_v61 = vpop.permute.xlu1 %485  ;;  %v1854_v34 = vld [vmem:[#allocation13_spill] sm:$0xff] }
  0xe8   :  { %v708_v8 = vmax.f32 %v644_v2, 0.0  ;;  %v577_v63 = vmul.f32 %v1840_v57, %v478_v55  ;;  %v1019_v41 = vpack.c.bf16 %v699_v33, %v698_v1  ;;  %v709_v4 = vmax.f32 %v645_v38, 0.0  ;;  %v1855_v1 = vld [vmem:[#allocation14_spill] sm:$0xff]  ;;  %v1856_v2 = vld [vmem:[#allocation9_spill] sm:$0xff] }
  0xe9   :  { %938 = vst [vmem:[#allocation2 + $0x70] sm:$0xff] %v1018_v15  ;;  %v578_v32 = vmul.f32 %v1841_v42, %v478_v55  ;;  %v579_v45 = vmul.f32 %v1842_v40, %v478_v55  ;;  %v710_v25 = vmax.f32 %v646_v44, 0.0  ;;  %v711_v17 = vmax.f32 %v647_v51, 0.0  ;;  %v1857_v15 = vld [vmem:[#allocation10_spill] sm:$0xff] }
  0xea   :  { %v640_v43 = vadd.f32 %v576_v7, %v1846_v21  ;;  %v641_v3 = vadd.f32 %v577_v63, %v1847_v53  ;;  %939 = vst [vmem:[#allocation2 + $0x78] sm:$0xff] %v1019_v41  ;;  %v1024_v46 = vpack.c.bf16 %v709_v4, %v708_v8  ;;  %v588_v26 = vmul.f32 %v1839_v56, %v490_v13  ;;  %v1859_v21 = vld [vmem:[#allocation18_spill] sm:$0xff] }
  0xeb   :  { %v642_v14 = vadd.f32 %v578_v32, %v1848_v60  ;;  %v643_v18 = vadd.f32 %v579_v45, %v1849_v16  ;;  %v1025_v20 = vpack.c.bf16 %v711_v17, %v710_v25  ;;  %v589_v5 = vmul.f32 %v1840_v57, %v490_v13  ;;  %v494_v0 = vpop.permute.xlu1 %493  ;;  %v1858_v25 = vld [vmem:[#allocation17_spill] sm:$0xff]  ;;  %v1861_v60 = vld [vmem:[#allocation28_spill] sm:$0xff] }
  0xec   :  { %v704_v24 = vmax.f32 %v640_v43, 0.0  ;;  %v705_v62 = vmax.f32 %v641_v3, 0.0  ;;  %944 = vst [vmem:[#allocation2 + $0xa0] sm:$0xff] %v1024_v46  ;;  %v590_v52 = vmul.f32 %v1841_v42, %v490_v13  ;;  %v591_v11 = vmul.f32 %v1842_v40, %v490_v13 }
  0xed   :  { %v706_v9 = vmax.f32 %v642_v14, 0.0  ;;  %v707_v10 = vmax.f32 %v643_v18, 0.0  ;;  %945 = vst [vmem:[#allocation2 + $0xa8] sm:$0xff] %v1025_v20  ;;  %v652_v49 = vadd.f32 %v588_v26, %v1850_v12  ;;  %v653_v22 = vadd.f32 %v589_v5, %v1851_v50 }
  0xee   :  { %v1022_v6 = vpack.c.bf16 %v705_v62, %v704_v24  ;;  %v584_v59 = vmul.f32 %v1839_v56, %v486_v61  ;;  %v654_v37 = vadd.f32 %v590_v52, %v1852_v27  ;;  %v655_v29 = vadd.f32 %v591_v11, %v1853_v28  ;;  %v1863_v11 = vld [vmem:[#allocation22_spill] sm:$0xff] }
  0xef   :  { %v1023_v19 = vpack.c.bf16 %v707_v10, %v706_v9  ;;  %v585_v23 = vmul.f32 %v1840_v57, %v486_v61  ;;  %v716_v31 = vmax.f32 %v652_v49, 0.0  ;;  %v717_v54 = vmax.f32 %v653_v22, 0.0  ;;  %v502_v18 = vpop.permute.xlu1 %501  ;;  %v1862_v10 = vld [vmem:[#allocation21_spill] sm:$0xff]  ;;  %v1864_v49 = vld [vmem:[#allocation15_spill] sm:$0xff]  ;;  %v1865_v22 = vld [vmem:[#allocation16_spill] sm:$0xff] }
  0xf0   :  { %942 = vst [vmem:[#allocation2 + $0x90] sm:$0xff] %v1022_v6  ;;  %v586_v48 = vmul.f32 %v1841_v42, %v486_v61  ;;  %v587_v55 = vmul.f32 %v1842_v40, %v486_v61  ;;  %v718_v39 = vmax.f32 %v654_v37, 0.0  ;;  %v719_v58 = vmax.f32 %v655_v29, 0.0  ;;  %v1860_v61 = vld [vmem:[#allocation27_spill] sm:$0xff] }
  0xf1   :  { %943 = vst [vmem:[#allocation2 + $0x98] sm:$0xff] %v1023_v19  ;;  %v648_v35 = vadd.f32 %v584_v59, %v1854_v34  ;;  %v649_v47 = vadd.f32 %v585_v23, %v1855_v1  ;;  %v1028_v30 = vpack.c.bf16 %v717_v54, %v716_v31  ;;  %v596_v7 = vmul.f32 %v1839_v56, %v498_v36  ;;  %v1869_v1 = vld [vmem:[#allocation25_spill] sm:$0xff] }
  0xf2   :  { %v650_v33 = vadd.f32 %v586_v48, %v1856_v2  ;;  %v651_v38 = vadd.f32 %v587_v55, %v1857_v15  ;;  %v1029_v44 = vpack.c.bf16 %v719_v58, %v718_v39  ;;  %v597_v63 = vmul.f32 %v1840_v57, %v498_v36  ;;  %v1866_v55 = vld [vmem:[#allocation29_spill] sm:$0xff]  ;;  %v1867_v39 = vld [vmem:[#allocation23_spill] sm:$0xff] }
  0xf3   :  { %v712_v51 = vmax.f32 %v648_v35, 0.0  ;;  %v713_v8 = vmax.f32 %v649_v47, 0.0  ;;  %948 = vst [vmem:[#allocation2 + $0xc0] sm:$0xff] %v1028_v30  ;;  %v598_v4 = vmul.f32 %v1841_v42, %v498_v36  ;;  %v599_v32 = vmul.f32 %v1842_v40, %v498_v36 }
  0xf4   :  { %v714_v13 = vmax.f32 %v650_v33, 0.0  ;;  %v715_v41 = vmax.f32 %v651_v38, 0.0  ;;  %949 = vst [vmem:[#allocation2 + $0xc8] sm:$0xff] %v1029_v44  ;;  %v660_v17 = vadd.f32 %v596_v7, %v1858_v25  ;;  %v661_v43 = vadd.f32 %v597_v63, %v1859_v21 }
  0xf5   :  { %v1026_v45 = vpack.c.bf16 %v713_v8, %v712_v51  ;;  %v592_v53 = vmul.f32 %v1839_v56, %v494_v0  ;;  %v662_v46 = vadd.f32 %v598_v4, %v1860_v61  ;;  %v663_v14 = vadd.f32 %v599_v32, %v1861_v60 }
  0xf6   :  { %v1027_v3 = vpack.c.bf16 %v715_v41, %v714_v13  ;;  %v593_v16 = vmul.f32 %v1840_v57, %v494_v0  ;;  %v724_v26 = vmax.f32 %v660_v17, 0.0  ;;  %v725_v20 = vmax.f32 %v661_v43, 0.0 }
  0xf7   :  { %946 = vst [vmem:[#allocation2 + $0xb0] sm:$0xff] %v1026_v45  ;;  %v594_v24 = vmul.f32 %v1841_v42, %v494_v0  ;;  %v595_v62 = vmul.f32 %v1842_v40, %v494_v0  ;;  %v726_v5 = vmax.f32 %v662_v46, 0.0  ;;  %v727_v9 = vmax.f32 %v663_v14, 0.0 }
  0xf8   :  { %947 = vst [vmem:[#allocation2 + $0xb8] sm:$0xff] %v1027_v3  ;;  %v656_v52 = vadd.f32 %v592_v53, %v1862_v10  ;;  %v657_v6 = vadd.f32 %v593_v16, %v1863_v11  ;;  %v1032_v12 = vpack.c.bf16 %v725_v20, %v724_v26  ;;  %v600_v19 = vmul.f32 %v1839_v56, %v502_v18  ;;  %v1868_v56 = vld [vmem:[#allocation24_spill] sm:$0xff] }
  0xf9   :  { %v658_v50 = vadd.f32 %v594_v24, %v1864_v49  ;;  %v659_v59 = vadd.f32 %v595_v62, %v1865_v22  ;;  %v1033_v27 = vpack.c.bf16 %v727_v9, %v726_v5  ;;  %v601_v29 = vmul.f32 %v1840_v57, %v502_v18 }
  0xfa   :  { %v720_v37 = vmax.f32 %v656_v52, 0.0  ;;  %v721_v28 = vmax.f32 %v657_v6, 0.0  ;;  %952 = vst [vmem:[#allocation2 + $0xe0] sm:$0xff] %v1032_v12  ;;  %v602_v31 = vmul.f32 %v1841_v42, %v502_v18  ;;  %v603_v54 = vmul.f32 %v1842_v40, %v502_v18 }
  0xfb   :  { %v722_v23 = vmax.f32 %v658_v50, 0.0  ;;  %v723_v36 = vmax.f32 %v659_v59, 0.0  ;;  %953 = vst [vmem:[#allocation2 + $0xe8] sm:$0xff] %v1033_v27  ;;  %v664_v0 = vadd.f32 %v600_v19, %v1866_v55  ;;  %v665_v58 = vadd.f32 %v601_v29, %v1867_v39 }
  0xfc   :  { %v1030_v48 = vpack.c.bf16 %v721_v28, %v720_v37  ;;  %v666_v35 = vadd.f32 %v602_v31, %v1868_v56  ;;  %v667_v47 = vadd.f32 %v603_v54, %v1869_v1 }
  0xfd   :  { %v1031_v34 = vpack.c.bf16 %v723_v36, %v722_v23  ;;  %v728_v57 = vmax.f32 %v664_v0, 0.0  ;;  %v729_v30 = vmax.f32 %v665_v58, 0.0 }
  0xfe   :  { %950 = vst [vmem:[#allocation2 + $0xd0] sm:$0xff] %v1030_v48  ;;  %v730_v42 = vmax.f32 %v666_v35, 0.0  ;;  %v731_v2 = vmax.f32 %v667_v47, 0.0 }
  0xff   :  { %951 = vst [vmem:[#allocation2 + $0xd8] sm:$0xff] %v1031_v34  ;;  %v1034_v40 = vpack.c.bf16 %v729_v30, %v728_v57 }
 0x100   :  { %v1035_v33 = vpack.c.bf16 %v731_v2, %v730_v42 }
 0x101   :  { %954 = vst [vmem:[#allocation2 + $0xf0] sm:$0xff] %v1034_v40 }
 0x102   :  { %955 = vst [vmem:[#allocation2 + $0xf8] sm:$0xff] %v1035_v33 }
 0x103   :  { %1059 = shalt.err (!%p1056_p4)
}
 0x104   :  { %s1060_s20 = scalar_lea.hbm %s1761_s2, 4096 }
 0x105   :  { %p1061_p5 = scmp.ne.s32.totalorder %s1761_s2, %s1060_s20  ;;  %p1064_p6 = scmp.lt.u32.totalorder %s1060_s20, %s1761_s2 }
 0x107   :  { %p1066_p7 = pnand %p1064_p6, %p1061_p5 }
 0x109   :  { %1069 = shalt.err (!%p1066_p7)
}
 0x10a   :  { %s1076_s25 = smov 256   ;;  %s1077_s26 = smov 16  }
 0x10b   :  { %967 = dma.vmem_to_hbm [thread:$0]  %s962_s16, 4096, %s1761_s2, [#allocation3], %s1076_s25, %s1076_s25, %s1077_s26  }
 0x10c   :  { %1070 = dma.done.wait [#allocation3], 4096  }
 0x10d   :  { %1071 = vsyncadd [#allocation3], 4294963200 }
 0x10e   :  { %971 = vsyncpa [#allocation3], 1 }

</bundles_post_ra>
